<compile_context>
chip_gen: v6e
topology: v6e:2x2x1
jax: 0.10.0
libtpu: 0.0.40
codegen_flags: <defaults>
</compile_context>

<pallas_src>
import jax
import jax.numpy as jnp
from jax.experimental import pallas as pl
from jax.experimental.pallas import tpu as pltpu


def mlp_kernel(w1_ref, b1_ref, w2_ref, b2_ref, x_ref, o_ref):
    # w1_ref: SMEM (4, 10), b1_ref: SMEM (10,), w2_ref: SMEM (10,), b2_ref: SMEM (1,)
    # x_ref : VMEM (4, TR, 128)  -- feature-major, batch dense on (sublane, lane)
    # o_ref : VMEM (TR, 128)
    F, H = w1_ref.shape
    feats = [x_ref[k] for k in range(F)]            # each (TR, 128), loaded once

    acc = None
    for j in range(H):                              # static unroll over 10 hidden units (VPU)
        hj = w1_ref[0, j] * feats[0]
        for k in range(1, F):
            hj = hj + w1_ref[k, j] * feats[k]
        hj = jnp.maximum(hj + b1_ref[j], 0.0)       # ReLU
        term = w2_ref[j] * hj
        acc = term if acc is None else acc + term

    o_ref[...] = (acc + b2_ref[0]).astype(o_ref.dtype)


def binary_classifier_forward(x, w1, b1, w2, b2, *, max_block_rows=2048):
    """x: (B, 4) f32; w1: (4, 10); b1: (10,); w2: (10,); b2: (1,) -> (B, 1)."""
    x = x.astype(jnp.float32)
    B, F = x.shape
    LANE = 128

    # Batch tile = TR sublane-rows of 128 lanes (TR multiple of 8), capped so
    # tiny inputs don't over-pad while large inputs get big, DMA-friendly tiles.
    rows128 = -(-B // LANE)                          # ceil(B / 128)
    TR = min(max_block_rows, ((rows128 + 7) // 8) * 8)
    tile_rows = TR * LANE
    grid = -(-B // tile_rows)                        # ceil(B / tile_rows)
    Bp = grid * tile_rows
    R = Bp // LANE

    # Lane-dense layout plumbing (wrapper side, not in the kernel).
    pad = Bp - B
    xp = jnp.pad(x, ((0, pad), (0, 0))) if pad else x
    xt = xp.T.reshape(F, R, LANE)                    # (4, R, 128)

    out2d = pl.pallas_call(
        mlp_kernel,
        out_shape=jax.ShapeDtypeStruct((R, LANE), jnp.float32),
        grid=(grid,),
        in_specs=[
            pl.BlockSpec(memory_space=pltpu.MemorySpace.SMEM),   # w1 (4, 10) resident scalars
            pl.BlockSpec(memory_space=pltpu.MemorySpace.SMEM),   # b1 (10,)
            pl.BlockSpec(memory_space=pltpu.MemorySpace.SMEM),   # w2 (10,)
            pl.BlockSpec(memory_space=pltpu.MemorySpace.SMEM),   # b2 (1,)
            pl.BlockSpec((F, TR, LANE), lambda i: (0, i, 0)),    # x tile (4, TR, 128)
        ],
        out_specs=pl.BlockSpec((TR, LANE), lambda i: (i, 0)),    # dense (TR, 128) output
        compiler_params=pltpu.CompilerParams(
            dimension_semantics=("parallel",),                   # megacore-shard batch axis
        ),
    )(w1, b1, w2, b2, xt)

    return out2d.reshape(Bp)[:B].reshape(B, 1)


def init_params(key):
    """Deterministic init mirroring nn.Linear's U(-1/sqrt(fan_in), 1/sqrt(fan_in))."""
    k1, k2, k3, k4 = jax.random.split(key, 4)
    bound1 = 1.0 / jnp.sqrt(4.0)
    bound2 = 1.0 / jnp.sqrt(10.0)
    w1 = jax.random.uniform(k1, (4, 10), jnp.float32, -bound1, bound1)
    b1 = jax.random.uniform(k2, (10,), jnp.float32, -bound1, bound1)
    w2 = jax.random.uniform(k3, (10,), jnp.float32, -bound2, bound2)
    b2 = jax.random.uniform(k4, (1,), jnp.float32, -bound2, bound2)
    return w1, b1, w2, b2


if __name__ == "__main__":
    key = jax.random.PRNGKey(0)
    kx, kp = jax.random.split(key)

    B = 8
    x = jax.random.normal(kx, (B, 4), dtype=jnp.float32)
    w1, b1, w2, b2 = init_params(kp)

    out = jax.block_until_ready(binary_classifier_forward(x, w1, b1, w2, b2))

    # Pure-JAX reference for sanity check.
    ref = jnp.maximum(x @ w1 + b1[None, :], 0.0) @ w2[:, None] + b2[0]
    assert out.shape == (B, 1)
    assert jnp.allclose(out, ref, atol=1e-5, rtol=1e-5)

    print("KERNEL_OK")
</pallas_src>

<mosaic_0001>
module attributes {stable_mosaic.version = 11 : i64} {
  func.func @mlp_kernel(%arg0: i32, %arg1: memref<4x10xf32, #tpu.memory_space<smem>>, %arg2: memref<10xf32, #tpu.memory_space<smem>>, %arg3: memref<10xf32, #tpu.memory_space<smem>>, %arg4: memref<1xf32, #tpu.memory_space<smem>>, %arg5: memref<4x8x128xf32, #tpu.memory_space<vmem>>, %arg6: memref<8x128xf32, #tpu.memory_space<vmem>>) attributes {dimension_semantics = [#tpu.dimension_semantics<parallel>], iteration_bounds = array<i64: 1>, scalar_prefetch = 0 : i64, scratch_operands = 0 : i64, tpu.core_type = #tpu.core_type<tc>, window_params = [{transform_indices = @transform_0, window_bounds = array<i64: 4, 10>}, {transform_indices = @transform_1, window_bounds = array<i64: 10>}, {transform_indices = @transform_2, window_bounds = array<i64: 10>}, {transform_indices = @transform_3, window_bounds = array<i64: 1>}, {transform_indices = @transform_4, window_bounds = array<i64: 4, 8, 128>}, {transform_indices = @transform_5, window_bounds = array<i64: 8, 128>}]} {
    %c0 = arith.constant 0 : index
    %c0_0 = arith.constant 0 : index
    %c0_1 = arith.constant 0 : index
    %0 = vector.load %arg5[%c0, %c0_0, %c0_1] : memref<4x8x128xf32, #tpu.memory_space<vmem>>, vector<1x8x128xf32>
    %1 = vector.shape_cast %0 : vector<1x8x128xf32> to vector<8x128xf32>
    %c1 = arith.constant 1 : index
    %c0_2 = arith.constant 0 : index
    %c0_3 = arith.constant 0 : index
    %2 = vector.load %arg5[%c1, %c0_2, %c0_3] : memref<4x8x128xf32, #tpu.memory_space<vmem>>, vector<1x8x128xf32>
    %3 = vector.shape_cast %2 : vector<1x8x128xf32> to vector<8x128xf32>
    %c2 = arith.constant 2 : index
    %c0_4 = arith.constant 0 : index
    %c0_5 = arith.constant 0 : index
    %4 = vector.load %arg5[%c2, %c0_4, %c0_5] : memref<4x8x128xf32, #tpu.memory_space<vmem>>, vector<1x8x128xf32>
    %5 = vector.shape_cast %4 : vector<1x8x128xf32> to vector<8x128xf32>
    %c3 = arith.constant 3 : index
    %c0_6 = arith.constant 0 : index
    %c0_7 = arith.constant 0 : index
    %6 = vector.load %arg5[%c3, %c0_6, %c0_7] : memref<4x8x128xf32, #tpu.memory_space<vmem>>, vector<1x8x128xf32>
    %7 = vector.shape_cast %6 : vector<1x8x128xf32> to vector<8x128xf32>
    %c0_8 = arith.constant 0 : index
    %c0_9 = arith.constant 0 : index
    %8 = memref.load %arg1[%c0_8, %c0_9] : memref<4x10xf32, #tpu.memory_space<smem>>
    %9 = vector.broadcast %8 : f32 to vector<8x128xf32>
    %10 = arith.mulf %9, %1 : vector<8x128xf32>
    %c1_10 = arith.constant 1 : index
    %c0_11 = arith.constant 0 : index
    %11 = memref.load %arg1[%c1_10, %c0_11] : memref<4x10xf32, #tpu.memory_space<smem>>
    %12 = vector.broadcast %11 : f32 to vector<8x128xf32>
    %13 = arith.mulf %12, %3 : vector<8x128xf32>
    %14 = arith.addf %10, %13 : vector<8x128xf32>
    %c2_12 = arith.constant 2 : index
    %c0_13 = arith.constant 0 : index
    %15 = memref.load %arg1[%c2_12, %c0_13] : memref<4x10xf32, #tpu.memory_space<smem>>
    %16 = vector.broadcast %15 : f32 to vector<8x128xf32>
    %17 = arith.mulf %16, %5 : vector<8x128xf32>
    %18 = arith.addf %14, %17 : vector<8x128xf32>
    %c3_14 = arith.constant 3 : index
    %c0_15 = arith.constant 0 : index
    %19 = memref.load %arg1[%c3_14, %c0_15] : memref<4x10xf32, #tpu.memory_space<smem>>
    %20 = vector.broadcast %19 : f32 to vector<8x128xf32>
    %21 = arith.mulf %20, %7 : vector<8x128xf32>
    %22 = arith.addf %18, %21 : vector<8x128xf32>
    %c0_16 = arith.constant 0 : index
    %23 = memref.load %arg2[%c0_16] : memref<10xf32, #tpu.memory_space<smem>>
    %24 = vector.broadcast %23 : f32 to vector<8x128xf32>
    %25 = arith.addf %22, %24 : vector<8x128xf32>
    %cst = arith.constant 0.000000e+00 : f32
    %26 = vector.broadcast %cst : f32 to vector<8x128xf32>
    %27 = arith.maximumf %25, %26 : vector<8x128xf32>
    %c0_17 = arith.constant 0 : index
    %28 = memref.load %arg3[%c0_17] : memref<10xf32, #tpu.memory_space<smem>>
    %29 = vector.broadcast %28 : f32 to vector<8x128xf32>
    %30 = arith.mulf %29, %27 : vector<8x128xf32>
    %c0_18 = arith.constant 0 : index
    %c1_19 = arith.constant 1 : index
    %31 = memref.load %arg1[%c0_18, %c1_19] : memref<4x10xf32, #tpu.memory_space<smem>>
    %32 = vector.broadcast %31 : f32 to vector<8x128xf32>
    %33 = arith.mulf %32, %1 : vector<8x128xf32>
    %c1_20 = arith.constant 1 : index
    %c1_21 = arith.constant 1 : index
    %34 = memref.load %arg1[%c1_20, %c1_21] : memref<4x10xf32, #tpu.memory_space<smem>>
    %35 = vector.broadcast %34 : f32 to vector<8x128xf32>
    %36 = arith.mulf %35, %3 : vector<8x128xf32>
    %37 = arith.addf %33, %36 : vector<8x128xf32>
    %c2_22 = arith.constant 2 : index
    %c1_23 = arith.constant 1 : index
    %38 = memref.load %arg1[%c2_22, %c1_23] : memref<4x10xf32, #tpu.memory_space<smem>>
    %39 = vector.broadcast %38 : f32 to vector<8x128xf32>
    %40 = arith.mulf %39, %5 : vector<8x128xf32>
    %41 = arith.addf %37, %40 : vector<8x128xf32>
    %c3_24 = arith.constant 3 : index
    %c1_25 = arith.constant 1 : index
    %42 = memref.load %arg1[%c3_24, %c1_25] : memref<4x10xf32, #tpu.memory_space<smem>>
    %43 = vector.broadcast %42 : f32 to vector<8x128xf32>
    %44 = arith.mulf %43, %7 : vector<8x128xf32>
    %45 = arith.addf %41, %44 : vector<8x128xf32>
    %c1_26 = arith.constant 1 : index
    %46 = memref.load %arg2[%c1_26] : memref<10xf32, #tpu.memory_space<smem>>
    %47 = vector.broadcast %46 : f32 to vector<8x128xf32>
    %48 = arith.addf %45, %47 : vector<8x128xf32>
    %cst_27 = arith.constant 0.000000e+00 : f32
    %49 = vector.broadcast %cst_27 : f32 to vector<8x128xf32>
    %50 = arith.maximumf %48, %49 : vector<8x128xf32>
    %c1_28 = arith.constant 1 : index
    %51 = memref.load %arg3[%c1_28] : memref<10xf32, #tpu.memory_space<smem>>
    %52 = vector.broadcast %51 : f32 to vector<8x128xf32>
    %53 = arith.mulf %52, %50 : vector<8x128xf32>
    %54 = arith.addf %30, %53 : vector<8x128xf32>
    %c0_29 = arith.constant 0 : index
    %c2_30 = arith.constant 2 : index
    %55 = memref.load %arg1[%c0_29, %c2_30] : memref<4x10xf32, #tpu.memory_space<smem>>
    %56 = vector.broadcast %55 : f32 to vector<8x128xf32>
    %57 = arith.mulf %56, %1 : vector<8x128xf32>
    %c1_31 = arith.constant 1 : index
    %c2_32 = arith.constant 2 : index
    %58 = memref.load %arg1[%c1_31, %c2_32] : memref<4x10xf32, #tpu.memory_space<smem>>
    %59 = vector.broadcast %58 : f32 to vector<8x128xf32>
    %60 = arith.mulf %59, %3 : vector<8x128xf32>
    %61 = arith.addf %57, %60 : vector<8x128xf32>
    %c2_33 = arith.constant 2 : index
    %c2_34 = arith.constant 2 : index
    %62 = memref.load %arg1[%c2_33, %c2_34] : memref<4x10xf32, #tpu.memory_space<smem>>
    %63 = vector.broadcast %62 : f32 to vector<8x128xf32>
    %64 = arith.mulf %63, %5 : vector<8x128xf32>
    %65 = arith.addf %61, %64 : vector<8x128xf32>
    %c3_35 = arith.constant 3 : index
    %c2_36 = arith.constant 2 : index
    %66 = memref.load %arg1[%c3_35, %c2_36] : memref<4x10xf32, #tpu.memory_space<smem>>
    %67 = vector.broadcast %66 : f32 to vector<8x128xf32>
    %68 = arith.mulf %67, %7 : vector<8x128xf32>
    %69 = arith.addf %65, %68 : vector<8x128xf32>
    %c2_37 = arith.constant 2 : index
    %70 = memref.load %arg2[%c2_37] : memref<10xf32, #tpu.memory_space<smem>>
    %71 = vector.broadcast %70 : f32 to vector<8x128xf32>
    %72 = arith.addf %69, %71 : vector<8x128xf32>
    %cst_38 = arith.constant 0.000000e+00 : f32
    %73 = vector.broadcast %cst_38 : f32 to vector<8x128xf32>
    %74 = arith.maximumf %72, %73 : vector<8x128xf32>
    %c2_39 = arith.constant 2 : index
    %75 = memref.load %arg3[%c2_39] : memref<10xf32, #tpu.memory_space<smem>>
    %76 = vector.broadcast %75 : f32 to vector<8x128xf32>
    %77 = arith.mulf %76, %74 : vector<8x128xf32>
    %78 = arith.addf %54, %77 : vector<8x128xf32>
    %c0_40 = arith.constant 0 : index
    %c3_41 = arith.constant 3 : index
    %79 = memref.load %arg1[%c0_40, %c3_41] : memref<4x10xf32, #tpu.memory_space<smem>>
    %80 = vector.broadcast %79 : f32 to vector<8x128xf32>
    %81 = arith.mulf %80, %1 : vector<8x128xf32>
    %c1_42 = arith.constant 1 : index
    %c3_43 = arith.constant 3 : index
    %82 = memref.load %arg1[%c1_42, %c3_43] : memref<4x10xf32, #tpu.memory_space<smem>>
    %83 = vector.broadcast %82 : f32 to vector<8x128xf32>
    %84 = arith.mulf %83, %3 : vector<8x128xf32>
    %85 = arith.addf %81, %84 : vector<8x128xf32>
    %c2_44 = arith.constant 2 : index
    %c3_45 = arith.constant 3 : index
    %86 = memref.load %arg1[%c2_44, %c3_45] : memref<4x10xf32, #tpu.memory_space<smem>>
    %87 = vector.broadcast %86 : f32 to vector<8x128xf32>
    %88 = arith.mulf %87, %5 : vector<8x128xf32>
    %89 = arith.addf %85, %88 : vector<8x128xf32>
    %c3_46 = arith.constant 3 : index
    %c3_47 = arith.constant 3 : index
    %90 = memref.load %arg1[%c3_46, %c3_47] : memref<4x10xf32, #tpu.memory_space<smem>>
    %91 = vector.broadcast %90 : f32 to vector<8x128xf32>
    %92 = arith.mulf %91, %7 : vector<8x128xf32>
    %93 = arith.addf %89, %92 : vector<8x128xf32>
    %c3_48 = arith.constant 3 : index
    %94 = memref.load %arg2[%c3_48] : memref<10xf32, #tpu.memory_space<smem>>
    %95 = vector.broadcast %94 : f32 to vector<8x128xf32>
    %96 = arith.addf %93, %95 : vector<8x128xf32>
    %cst_49 = arith.constant 0.000000e+00 : f32
    %97 = vector.broadcast %cst_49 : f32 to vector<8x128xf32>
    %98 = arith.maximumf %96, %97 : vector<8x128xf32>
    %c3_50 = arith.constant 3 : index
    %99 = memref.load %arg3[%c3_50] : memref<10xf32, #tpu.memory_space<smem>>
    %100 = vector.broadcast %99 : f32 to vector<8x128xf32>
    %101 = arith.mulf %100, %98 : vector<8x128xf32>
    %102 = arith.addf %78, %101 : vector<8x128xf32>
    %c0_51 = arith.constant 0 : index
    %c4 = arith.constant 4 : index
    %103 = memref.load %arg1[%c0_51, %c4] : memref<4x10xf32, #tpu.memory_space<smem>>
    %104 = vector.broadcast %103 : f32 to vector<8x128xf32>
    %105 = arith.mulf %104, %1 : vector<8x128xf32>
    %c1_52 = arith.constant 1 : index
    %c4_53 = arith.constant 4 : index
    %106 = memref.load %arg1[%c1_52, %c4_53] : memref<4x10xf32, #tpu.memory_space<smem>>
    %107 = vector.broadcast %106 : f32 to vector<8x128xf32>
    %108 = arith.mulf %107, %3 : vector<8x128xf32>
    %109 = arith.addf %105, %108 : vector<8x128xf32>
    %c2_54 = arith.constant 2 : index
    %c4_55 = arith.constant 4 : index
    %110 = memref.load %arg1[%c2_54, %c4_55] : memref<4x10xf32, #tpu.memory_space<smem>>
    %111 = vector.broadcast %110 : f32 to vector<8x128xf32>
    %112 = arith.mulf %111, %5 : vector<8x128xf32>
    %113 = arith.addf %109, %112 : vector<8x128xf32>
    %c3_56 = arith.constant 3 : index
    %c4_57 = arith.constant 4 : index
    %114 = memref.load %arg1[%c3_56, %c4_57] : memref<4x10xf32, #tpu.memory_space<smem>>
    %115 = vector.broadcast %114 : f32 to vector<8x128xf32>
    %116 = arith.mulf %115, %7 : vector<8x128xf32>
    %117 = arith.addf %113, %116 : vector<8x128xf32>
    %c4_58 = arith.constant 4 : index
    %118 = memref.load %arg2[%c4_58] : memref<10xf32, #tpu.memory_space<smem>>
    %119 = vector.broadcast %118 : f32 to vector<8x128xf32>
    %120 = arith.addf %117, %119 : vector<8x128xf32>
    %cst_59 = arith.constant 0.000000e+00 : f32
    %121 = vector.broadcast %cst_59 : f32 to vector<8x128xf32>
    %122 = arith.maximumf %120, %121 : vector<8x128xf32>
    %c4_60 = arith.constant 4 : index
    %123 = memref.load %arg3[%c4_60] : memref<10xf32, #tpu.memory_space<smem>>
    %124 = vector.broadcast %123 : f32 to vector<8x128xf32>
    %125 = arith.mulf %124, %122 : vector<8x128xf32>
    %126 = arith.addf %102, %125 : vector<8x128xf32>
    %c0_61 = arith.constant 0 : index
    %c5 = arith.constant 5 : index
    %127 = memref.load %arg1[%c0_61, %c5] : memref<4x10xf32, #tpu.memory_space<smem>>
    %128 = vector.broadcast %127 : f32 to vector<8x128xf32>
    %129 = arith.mulf %128, %1 : vector<8x128xf32>
    %c1_62 = arith.constant 1 : index
    %c5_63 = arith.constant 5 : index
    %130 = memref.load %arg1[%c1_62, %c5_63] : memref<4x10xf32, #tpu.memory_space<smem>>
    %131 = vector.broadcast %130 : f32 to vector<8x128xf32>
    %132 = arith.mulf %131, %3 : vector<8x128xf32>
    %133 = arith.addf %129, %132 : vector<8x128xf32>
    %c2_64 = arith.constant 2 : index
    %c5_65 = arith.constant 5 : index
    %134 = memref.load %arg1[%c2_64, %c5_65] : memref<4x10xf32, #tpu.memory_space<smem>>
    %135 = vector.broadcast %134 : f32 to vector<8x128xf32>
    %136 = arith.mulf %135, %5 : vector<8x128xf32>
    %137 = arith.addf %133, %136 : vector<8x128xf32>
    %c3_66 = arith.constant 3 : index
    %c5_67 = arith.constant 5 : index
    %138 = memref.load %arg1[%c3_66, %c5_67] : memref<4x10xf32, #tpu.memory_space<smem>>
    %139 = vector.broadcast %138 : f32 to vector<8x128xf32>
    %140 = arith.mulf %139, %7 : vector<8x128xf32>
    %141 = arith.addf %137, %140 : vector<8x128xf32>
    %c5_68 = arith.constant 5 : index
    %142 = memref.load %arg2[%c5_68] : memref<10xf32, #tpu.memory_space<smem>>
    %143 = vector.broadcast %142 : f32 to vector<8x128xf32>
    %144 = arith.addf %141, %143 : vector<8x128xf32>
    %cst_69 = arith.constant 0.000000e+00 : f32
    %145 = vector.broadcast %cst_69 : f32 to vector<8x128xf32>
    %146 = arith.maximumf %144, %145 : vector<8x128xf32>
    %c5_70 = arith.constant 5 : index
    %147 = memref.load %arg3[%c5_70] : memref<10xf32, #tpu.memory_space<smem>>
    %148 = vector.broadcast %147 : f32 to vector<8x128xf32>
    %149 = arith.mulf %148, %146 : vector<8x128xf32>
    %150 = arith.addf %126, %149 : vector<8x128xf32>
    %c0_71 = arith.constant 0 : index
    %c6 = arith.constant 6 : index
    %151 = memref.load %arg1[%c0_71, %c6] : memref<4x10xf32, #tpu.memory_space<smem>>
    %152 = vector.broadcast %151 : f32 to vector<8x128xf32>
    %153 = arith.mulf %152, %1 : vector<8x128xf32>
    %c1_72 = arith.constant 1 : index
    %c6_73 = arith.constant 6 : index
    %154 = memref.load %arg1[%c1_72, %c6_73] : memref<4x10xf32, #tpu.memory_space<smem>>
    %155 = vector.broadcast %154 : f32 to vector<8x128xf32>
    %156 = arith.mulf %155, %3 : vector<8x128xf32>
    %157 = arith.addf %153, %156 : vector<8x128xf32>
    %c2_74 = arith.constant 2 : index
    %c6_75 = arith.constant 6 : index
    %158 = memref.load %arg1[%c2_74, %c6_75] : memref<4x10xf32, #tpu.memory_space<smem>>
    %159 = vector.broadcast %158 : f32 to vector<8x128xf32>
    %160 = arith.mulf %159, %5 : vector<8x128xf32>
    %161 = arith.addf %157, %160 : vector<8x128xf32>
    %c3_76 = arith.constant 3 : index
    %c6_77 = arith.constant 6 : index
    %162 = memref.load %arg1[%c3_76, %c6_77] : memref<4x10xf32, #tpu.memory_space<smem>>
    %163 = vector.broadcast %162 : f32 to vector<8x128xf32>
    %164 = arith.mulf %163, %7 : vector<8x128xf32>
    %165 = arith.addf %161, %164 : vector<8x128xf32>
    %c6_78 = arith.constant 6 : index
    %166 = memref.load %arg2[%c6_78] : memref<10xf32, #tpu.memory_space<smem>>
    %167 = vector.broadcast %166 : f32 to vector<8x128xf32>
    %168 = arith.addf %165, %167 : vector<8x128xf32>
    %cst_79 = arith.constant 0.000000e+00 : f32
    %169 = vector.broadcast %cst_79 : f32 to vector<8x128xf32>
    %170 = arith.maximumf %168, %169 : vector<8x128xf32>
    %c6_80 = arith.constant 6 : index
    %171 = memref.load %arg3[%c6_80] : memref<10xf32, #tpu.memory_space<smem>>
    %172 = vector.broadcast %171 : f32 to vector<8x128xf32>
    %173 = arith.mulf %172, %170 : vector<8x128xf32>
    %174 = arith.addf %150, %173 : vector<8x128xf32>
    %c0_81 = arith.constant 0 : index
    %c7 = arith.constant 7 : index
    %175 = memref.load %arg1[%c0_81, %c7] : memref<4x10xf32, #tpu.memory_space<smem>>
    %176 = vector.broadcast %175 : f32 to vector<8x128xf32>
    %177 = arith.mulf %176, %1 : vector<8x128xf32>
    %c1_82 = arith.constant 1 : index
    %c7_83 = arith.constant 7 : index
    %178 = memref.load %arg1[%c1_82, %c7_83] : memref<4x10xf32, #tpu.memory_space<smem>>
    %179 = vector.broadcast %178 : f32 to vector<8x128xf32>
    %180 = arith.mulf %179, %3 : vector<8x128xf32>
    %181 = arith.addf %177, %180 : vector<8x128xf32>
    %c2_84 = arith.constant 2 : index
    %c7_85 = arith.constant 7 : index
    %182 = memref.load %arg1[%c2_84, %c7_85] : memref<4x10xf32, #tpu.memory_space<smem>>
    %183 = vector.broadcast %182 : f32 to vector<8x128xf32>
    %184 = arith.mulf %183, %5 : vector<8x128xf32>
    %185 = arith.addf %181, %184 : vector<8x128xf32>
    %c3_86 = arith.constant 3 : index
    %c7_87 = arith.constant 7 : index
    %186 = memref.load %arg1[%c3_86, %c7_87] : memref<4x10xf32, #tpu.memory_space<smem>>
    %187 = vector.broadcast %186 : f32 to vector<8x128xf32>
    %188 = arith.mulf %187, %7 : vector<8x128xf32>
    %189 = arith.addf %185, %188 : vector<8x128xf32>
    %c7_88 = arith.constant 7 : index
    %190 = memref.load %arg2[%c7_88] : memref<10xf32, #tpu.memory_space<smem>>
    %191 = vector.broadcast %190 : f32 to vector<8x128xf32>
    %192 = arith.addf %189, %191 : vector<8x128xf32>
    %cst_89 = arith.constant 0.000000e+00 : f32
    %193 = vector.broadcast %cst_89 : f32 to vector<8x128xf32>
    %194 = arith.maximumf %192, %193 : vector<8x128xf32>
    %c7_90 = arith.constant 7 : index
    %195 = memref.load %arg3[%c7_90] : memref<10xf32, #tpu.memory_space<smem>>
    %196 = vector.broadcast %195 : f32 to vector<8x128xf32>
    %197 = arith.mulf %196, %194 : vector<8x128xf32>
    %198 = arith.addf %174, %197 : vector<8x128xf32>
    %c0_91 = arith.constant 0 : index
    %c8 = arith.constant 8 : index
    %199 = memref.load %arg1[%c0_91, %c8] : memref<4x10xf32, #tpu.memory_space<smem>>
    %200 = vector.broadcast %199 : f32 to vector<8x128xf32>
    %201 = arith.mulf %200, %1 : vector<8x128xf32>
    %c1_92 = arith.constant 1 : index
    %c8_93 = arith.constant 8 : index
    %202 = memref.load %arg1[%c1_92, %c8_93] : memref<4x10xf32, #tpu.memory_space<smem>>
    %203 = vector.broadcast %202 : f32 to vector<8x128xf32>
    %204 = arith.mulf %203, %3 : vector<8x128xf32>
    %205 = arith.addf %201, %204 : vector<8x128xf32>
    %c2_94 = arith.constant 2 : index
    %c8_95 = arith.constant 8 : index
    %206 = memref.load %arg1[%c2_94, %c8_95] : memref<4x10xf32, #tpu.memory_space<smem>>
    %207 = vector.broadcast %206 : f32 to vector<8x128xf32>
    %208 = arith.mulf %207, %5 : vector<8x128xf32>
    %209 = arith.addf %205, %208 : vector<8x128xf32>
    %c3_96 = arith.constant 3 : index
    %c8_97 = arith.constant 8 : index
    %210 = memref.load %arg1[%c3_96, %c8_97] : memref<4x10xf32, #tpu.memory_space<smem>>
    %211 = vector.broadcast %210 : f32 to vector<8x128xf32>
    %212 = arith.mulf %211, %7 : vector<8x128xf32>
    %213 = arith.addf %209, %212 : vector<8x128xf32>
    %c8_98 = arith.constant 8 : index
    %214 = memref.load %arg2[%c8_98] : memref<10xf32, #tpu.memory_space<smem>>
    %215 = vector.broadcast %214 : f32 to vector<8x128xf32>
    %216 = arith.addf %213, %215 : vector<8x128xf32>
    %cst_99 = arith.constant 0.000000e+00 : f32
    %217 = vector.broadcast %cst_99 : f32 to vector<8x128xf32>
    %218 = arith.maximumf %216, %217 : vector<8x128xf32>
    %c8_100 = arith.constant 8 : index
    %219 = memref.load %arg3[%c8_100] : memref<10xf32, #tpu.memory_space<smem>>
    %220 = vector.broadcast %219 : f32 to vector<8x128xf32>
    %221 = arith.mulf %220, %218 : vector<8x128xf32>
    %222 = arith.addf %198, %221 : vector<8x128xf32>
    %c0_101 = arith.constant 0 : index
    %c9 = arith.constant 9 : index
    %223 = memref.load %arg1[%c0_101, %c9] : memref<4x10xf32, #tpu.memory_space<smem>>
    %224 = vector.broadcast %223 : f32 to vector<8x128xf32>
    %225 = arith.mulf %224, %1 : vector<8x128xf32>
    %c1_102 = arith.constant 1 : index
    %c9_103 = arith.constant 9 : index
    %226 = memref.load %arg1[%c1_102, %c9_103] : memref<4x10xf32, #tpu.memory_space<smem>>
    %227 = vector.broadcast %226 : f32 to vector<8x128xf32>
    %228 = arith.mulf %227, %3 : vector<8x128xf32>
    %229 = arith.addf %225, %228 : vector<8x128xf32>
    %c2_104 = arith.constant 2 : index
    %c9_105 = arith.constant 9 : index
    %230 = memref.load %arg1[%c2_104, %c9_105] : memref<4x10xf32, #tpu.memory_space<smem>>
    %231 = vector.broadcast %230 : f32 to vector<8x128xf32>
    %232 = arith.mulf %231, %5 : vector<8x128xf32>
    %233 = arith.addf %229, %232 : vector<8x128xf32>
    %c3_106 = arith.constant 3 : index
    %c9_107 = arith.constant 9 : index
    %234 = memref.load %arg1[%c3_106, %c9_107] : memref<4x10xf32, #tpu.memory_space<smem>>
    %235 = vector.broadcast %234 : f32 to vector<8x128xf32>
    %236 = arith.mulf %235, %7 : vector<8x128xf32>
    %237 = arith.addf %233, %236 : vector<8x128xf32>
    %c9_108 = arith.constant 9 : index
    %238 = memref.load %arg2[%c9_108] : memref<10xf32, #tpu.memory_space<smem>>
    %239 = vector.broadcast %238 : f32 to vector<8x128xf32>
    %240 = arith.addf %237, %239 : vector<8x128xf32>
    %cst_109 = arith.constant 0.000000e+00 : f32
    %241 = vector.broadcast %cst_109 : f32 to vector<8x128xf32>
    %242 = arith.maximumf %240, %241 : vector<8x128xf32>
    %c9_110 = arith.constant 9 : index
    %243 = memref.load %arg3[%c9_110] : memref<10xf32, #tpu.memory_space<smem>>
    %244 = vector.broadcast %243 : f32 to vector<8x128xf32>
    %245 = arith.mulf %244, %242 : vector<8x128xf32>
    %246 = arith.addf %222, %245 : vector<8x128xf32>
    %c0_111 = arith.constant 0 : index
    %247 = memref.load %arg4[%c0_111] : memref<1xf32, #tpu.memory_space<smem>>
    %248 = vector.broadcast %247 : f32 to vector<8x128xf32>
    %249 = arith.addf %246, %248 : vector<8x128xf32>
    %c0_112 = arith.constant 0 : index
    %c0_113 = arith.constant 0 : index
    %250 = vector.load %arg6[%c0_112, %c0_113] : memref<8x128xf32, #tpu.memory_space<vmem>>, vector<8x128xf32>
    tpu.vector_store %arg6[%c0_112, %c0_113], %249 {strides = array<i32>} : memref<8x128xf32, #tpu.memory_space<vmem>>, vector<8x128xf32>,
    return
  }
  func.func @transform_0(%arg0: i32) -> (i32, i32) {
    %c0_i32 = arith.constant 0 : i32
    %c0_i32_0 = arith.constant 0 : i32
    %c0_i32_1 = arith.constant 0 : i32
    return %c0_i32, %c0_i32_0 : i32, i32
  }
  func.func @transform_1(%arg0: i32) -> i32 {
    %c0_i32 = arith.constant 0 : i32
    %c0_i32_0 = arith.constant 0 : i32
    return %c0_i32 : i32
  }
  func.func @transform_2(%arg0: i32) -> i32 {
    %c0_i32 = arith.constant 0 : i32
    %c0_i32_0 = arith.constant 0 : i32
    return %c0_i32 : i32
  }
  func.func @transform_3(%arg0: i32) -> i32 {
    %c0_i32 = arith.constant 0 : i32
    %c0_i32_0 = arith.constant 0 : i32
    return %c0_i32 : i32
  }
  func.func @transform_4(%arg0: i32) -> (i32, i32, i32) {
    %c0_i32 = arith.constant 0 : i32
    %c0_i32_0 = arith.constant 0 : i32
    %c0_i32_1 = arith.constant 0 : i32
    return %c0_i32, %arg0, %c0_i32_0 : i32, i32, i32
  }
  func.func @transform_5(%arg0: i32) -> (i32, i32) {
    %c0_i32 = arith.constant 0 : i32
    %c0_i32_0 = arith.constant 0 : i32
    return %arg0, %c0_i32 : i32, i32
  }
}

</mosaic_0001>

<bundles_post_ra>
// kernel: tpu_custom_call.1
= control target key start
LH: loop header
LB: loop body
LE: loop exit
PB: predicated region body
PF: predicated region fallthrough
CT: control target
= control target key end

     0   :  { %11 = vsyncpa [#allocation6], 0  ;;  %s635_s0 = inlined_call_operand.hbm [shape: f32[4,10], index: 0, kind: input, shape index: {}]   ;;  %s636_s1 = inlined_call_operand.vmem [shape: f32[10], index: 1, kind: input, shape index: {}]   ;;  %s637_s2 = inlined_call_operand.vmem [shape: f32[10], index: 2, kind: input, shape index: {}]   ;;  %s638_s3 = inlined_call_operand.<no memory space> [shape: f32[1], index: 3, kind: input, shape index: {}]   ;;  %s639_s4 = inlined_call_operand.hbm [shape: f32[4,8,128], index: 4, kind: input, shape index: {}]   ;;  %s640_s5 = inlined_call_operand.hbm [shape: f32[8,128], index: 5, kind: output, shape index: {}]  }
   0x1   :  { %12 = vsyncpa [#allocation7], 0 }
   0x2   :  { %13 = vsyncpa [#allocation10], 0 }
   0x3   :  { %14 = vsyncpa [#allocation4], 0 }
   0x4   :  { %15 = vsyncpa [#allocation5], 0  ;;  %s30_s20 = sshll.u32 %s636_s1, 4  ;;  %s475_s21 = smov [#allocation3]   ;;  %s31_s20 = int_to_ptr.vmem [resolvable:$true] %s30_s20 }
   0x5   :  { %23 = dma.hbm_to_smem %s635_s0, 64, %s475_s21, [#allocation6]  }
   0x6   :  { %s401_s24 = scalar_lea.vmem %s31_s20, 16  ;;  %p406_p1 = scmp.lt.s32.totalorder %s31_s20, %s31_s20 }
   0x7   :  { %p402_p0 = scmp.ne.s32.totalorder %s31_s20, %s401_s24  ;;  %p407_p2 = scmp.lt.s32.totalorder %s401_s24, %s401_s24 }
   0x9   :  { %p408_p3 = por %p407_p2, %p406_p1 }
   0xb   :  { %p409_p4 = pnand %p408_p3, %p402_p0 }
   0xd   :  { %412 = shalt.err (!%p409_p4)
}
   0xe   :  { %s476_s25 = smov [#allocation8]   ;;  %s40_s28 = sshll.u32 %s637_s2, 4  ;;  %s41_s28 = int_to_ptr.vmem [resolvable:$true] %s40_s28 }
   0xf   :  { %33 = dma.vmem_to_smem %s31_s20, 16, %s476_s25, [#allocation7]  }
  0x10   :  { %s413_s1 = scalar_lea.vmem %s41_s28, 16  ;;  %p418_p6 = scmp.lt.s32.totalorder %s41_s28, %s41_s28 }
  0x11   :  { %p414_p5 = scmp.ne.s32.totalorder %s41_s28, %s413_s1  ;;  %p419_p7 = scmp.lt.s32.totalorder %s413_s1, %s413_s1 }
  0x13   :  { %p420_p8 = por %p419_p7, %p418_p6 }
  0x15   :  { %p421_p9 = pnand %p420_p8, %p414_p5 }
  0x17   :  { %424 = shalt.err (!%p421_p9)
}
  0x18   :  { %s477_s0 = smov [#allocation9]   ;;  %s478_s29 = smov [#allocation11]  }
  0x19   :  { %43 = dma.vmem_to_smem %s41_s28, 16, %s477_s0, [#allocation10]  }
  0x1a   :  { %s51_s30 = sshll.u32 %s478_s29, 4  ;;  %s52_s30 = int_to_ptr.vmem [resolvable:$true] %s51_s30 }
  0x1b   :  { %s433_s6 = scalar_lea.vmem %s52_s30, 512  ;;  %p438_p11 = scmp.lt.s32.totalorder %s52_s30, %s52_s30 }
  0x1c   :  { %p434_p10 = scmp.ne.s32.totalorder %s52_s30, %s433_s6  ;;  %p439_p12 = scmp.lt.s32.totalorder %s433_s6, %s433_s6 }
  0x1e   :  { %p440_p13 = por %p439_p12, %p438_p11 }
  0x20   :  { %p441_p0 = pnand %p440_p13, %p434_p10 }
  0x22   :  { %444 = shalt.err (!%p441_p0)
}
  0x23   :  { %s479_s2 = smov 128   ;;  %s480_s7 = smov 8  }
  0x24   :  { %57 = dma.hbm_to_vmem [thread:$0]  %s639_s4, 512, %s52_s30, [#allocation4], %s479_s2, %s479_s2, %s480_s7  }
  0x25   :  { %465 = dma.done.wait [#allocation6], 64  }
  0x26   :  { %466 = vsyncadd [#allocation6], 4294967232 }
  0x27   :  { %467 = dma.done.wait [#allocation7], 16  }
  0x28   :  { %468 = vsyncadd [#allocation7], 4294967280 }
  0x29   :  { %469 = dma.done.wait [#allocation10], 16  }
  0x2a   :  { %470 = vsyncadd [#allocation10], 4294967280 }
  0x2b   :  { %471 = dma.done.wait [#allocation4], 512  }
  0x2c   :  { %472 = vsyncadd [#allocation4], 4294966784 }
  0x2d   :  { %70 = sfence }
  0x2e   :  { %s78_s10 = sld [smem:[#allocation3]]  ;;  %v530_v0 = vld [vmem:[#allocation11] sm:$0xff]  ;;  %v532_v1 = vld [vmem:[#allocation11 + $0x8] sm:$0xff]  ;;  %v538_v6 = vld [vmem:[#allocation11 + $0x10] sm:$0xff] }
  0x2f   :  { %s329_s11 = sld [smem:[#allocation3 + $0x80]]  ;;  %v545_v15 = vld [vmem:[#allocation11 + $0x18] sm:$0xff] }
  0x30   :  { %s330_s12 = sld [smem:[#allocation3 + $0x100]] }
  0x31   :  { %s524_s13 = sld [smem:[#allocation3 + $0x180]] }
  0x32   :  { %s526_s14 = sld [smem:[#allocation8]] }
  0x33   :  { %s528_s15 = sld [smem:[#allocation9]] }
  0x34   :  { %s332_s16 = sld [smem:[#allocation3 + $0x1]]  ;;  %v79_v2 = vstv %s78_s10 }
  0x35   :  { %v82_v3 = vstv %s329_s11  ;;  %s333_s4 = sld [smem:[#allocation3 + $0x81]]  ;;  %v80_v4 = vmul.f32 %v79_v2, %v530_v0 }
  0x36   :  { %s334_s17 = sld [smem:[#allocation3 + $0x101]]  ;;  %v83_v5 = vmul.f32 %v82_v3, %v532_v1  ;;  %v86_v7 = vstv %s330_s12 }
  0x37   :  { %s335_s18 = sld [smem:[#allocation3 + $0x181]]  ;;  %v87_v12 = vmul.f32 %v86_v7, %v538_v6  ;;  %v90_v16 = vstv %s524_s13 }
  0x38   :  { %s536_s19 = sld [smem:[#allocation8 + $0x1]]  ;;  %v84_v11 = vadd.f32 %v83_v5, %v80_v4  ;;  %v91_v21 = vmul.f32 %v90_v16, %v545_v15  ;;  %v94_v33 = vstv %s526_s14 }
  0x39   :  { %s540_s20 = sld [smem:[#allocation9 + $0x1]]  ;;  %v98_v52 = vstv %s528_s15 }
  0x3a   :  { %v101_v8 = vstv %s332_s16  ;;  %s338_s21 = sld [smem:[#allocation3 + $0x2]]  ;;  %v88_v20 = vadd.f32 %v87_v12, %v84_v11 }
  0x3b   :  { %v102_v9 = vmul.f32 %v101_v8, %v530_v0  ;;  %v104_v10 = vstv %s333_s4  ;;  %s339_s22 = sld [smem:[#allocation3 + $0x82]] }
  0x3c   :  { %v105_v13 = vmul.f32 %v104_v10, %v532_v1  ;;  %v108_v14 = vstv %s334_s17  ;;  %s340_s23 = sld [smem:[#allocation3 + $0x102]]  ;;  %v92_v31 = vadd.f32 %v91_v21, %v88_v20 }
  0x3d   :  { %v109_v17 = vmul.f32 %v108_v14, %v538_v6  ;;  %s341_s24 = sld [smem:[#allocation3 + $0x182]]  ;;  %v112_v19 = vstv %s335_s18 }
  0x3e   :  { %v106_v18 = vadd.f32 %v105_v13, %v102_v9  ;;  %s549_s25 = sld [smem:[#allocation8 + $0x2]]  ;;  %v113_v24 = vmul.f32 %v112_v19, %v545_v15  ;;  %v116_v36 = vstv %s536_s19  ;;  %v95_v41 = vadd.f32 %v94_v33, %v92_v31 }
  0x3f   :  { %s551_s26 = sld [smem:[#allocation9 + $0x2]]  ;;  %v120_v59 = vstv %s540_s20 }
  0x40   :  { %v124_v22 = vstv %s338_s21  ;;  %s344_s27 = sld [smem:[#allocation3 + $0x3]]  ;;  %v110_v23 = vadd.f32 %v109_v17, %v106_v18  ;;  %v96_v51 = vmax.f32 %v95_v41, 0.0 }
  0x41   :  { %v125_v25 = vmul.f32 %v124_v22, %v530_v0  ;;  %v127_v26 = vstv %s339_s22  ;;  %s345_s28 = sld [smem:[#allocation3 + $0x83]] }
  0x42   :  { %v128_v27 = vmul.f32 %v127_v26, %v532_v1  ;;  %v131_v28 = vstv %s340_s23  ;;  %s346_s1 = sld [smem:[#allocation3 + $0x103]]  ;;  %v114_v34 = vadd.f32 %v113_v24, %v110_v23  ;;  %v99_v7 = vmul.f32 %v98_v52, %v96_v51 }
  0x43   :  { %v132_v29 = vmul.f32 %v131_v28, %v538_v6  ;;  %v135_v30 = vstv %s341_s24  ;;  %s347_s0 = sld [smem:[#allocation3 + $0x183]] }
  0x44   :  { %v129_v32 = vadd.f32 %v128_v27, %v125_v25  ;;  %s558_s29 = sld [smem:[#allocation8 + $0x3]]  ;;  %v136_v35 = vmul.f32 %v135_v30, %v545_v15  ;;  %v117_v44 = vadd.f32 %v116_v36, %v114_v34  ;;  %v139_v48 = vstv %s549_s25 }
  0x45   :  { %s562_s30 = sld [smem:[#allocation9 + $0x3]]  ;;  %v143_v10 = vstv %s551_s26 }
  0x46   :  { %v133_v37 = vadd.f32 %v132_v29, %v129_v32  ;;  %v147_v38 = vstv %s344_s27  ;;  %s350_s6 = sld [smem:[#allocation3 + $0x4]]  ;;  %v118_v55 = vmax.f32 %v117_v44, 0.0 }
  0x47   :  { %v148_v39 = vmul.f32 %v147_v38, %v530_v0  ;;  %v150_v40 = vstv %s345_s28  ;;  %s351_s2 = sld [smem:[#allocation3 + $0x84]] }
  0x48   :  { %v151_v42 = vmul.f32 %v150_v40, %v532_v1  ;;  %v154_v43 = vstv %s346_s1  ;;  %s352_s7 = sld [smem:[#allocation3 + $0x104]]  ;;  %v137_v45 = vadd.f32 %v136_v35, %v133_v37  ;;  %v121_v8 = vmul.f32 %v120_v59, %v118_v55 }
  0x49   :  { %v155_v46 = vmul.f32 %v154_v43, %v538_v6  ;;  %v158_v47 = vstv %s347_s0  ;;  %s353_s8 = sld [smem:[#allocation3 + $0x184]] }
  0x4a   :  { %v152_v49 = vadd.f32 %v151_v42, %v148_v39  ;;  %v159_v50 = vmul.f32 %v158_v47, %v545_v15  ;;  %s570_s9 = sld [smem:[#allocation8 + $0x4]]  ;;  %v140_v56 = vadd.f32 %v139_v48, %v137_v45  ;;  %v162_v63 = vstv %s558_s29 }
  0x4b   :  { %s572_s10 = sld [smem:[#allocation9 + $0x4]]  ;;  %v122_v21 = vadd.f32 %v121_v8, %v99_v7  ;;  %v166_v28 = vstv %s562_s30 }
  0x4c   :  { %v156_v53 = vadd.f32 %v155_v46, %v152_v49  ;;  %v170_v54 = vstv %s350_s6  ;;  %s356_s11 = sld [smem:[#allocation3 + $0x5]]  ;;  %v141_v9 = vmax.f32 %v140_v56, 0.0 }
  0x4d   :  { %v171_v57 = vmul.f32 %v170_v54, %v530_v0  ;;  %v173_v58 = vstv %s351_s2  ;;  %s357_s12 = sld [smem:[#allocation3 + $0x85]] }
  0x4e   :  { %v160_v60 = vadd.f32 %v159_v50, %v156_v53  ;;  %v174_v61 = vmul.f32 %v173_v58, %v532_v1  ;;  %v177_v62 = vstv %s352_s7  ;;  %s358_s13 = sld [smem:[#allocation3 + $0x105]]  ;;  %v144_v22 = vmul.f32 %v143_v10, %v141_v9 }
  0x4f   :  { %v178_v2 = vmul.f32 %v177_v62, %v538_v6  ;;  %v181_v3 = vstv %s353_s8  ;;  %s359_s14 = sld [smem:[#allocation3 + $0x185]] }
  0x50   :  { %v175_v4 = vadd.f32 %v174_v61, %v171_v57  ;;  %v182_v5 = vmul.f32 %v181_v3, %v545_v15  ;;  %s581_s15 = sld [smem:[#allocation8 + $0x5]]  ;;  %v163_v11 = vadd.f32 %v162_v63, %v160_v60  ;;  %v185_v18 = vstv %s570_s9 }
  0x51   :  { %s583_s16 = sld [smem:[#allocation9 + $0x5]]  ;;  %v145_v32 = vadd.f32 %v144_v22, %v122_v21  ;;  %v189_v43 = vstv %s572_s10 }
  0x52   :  { %v179_v12 = vadd.f32 %v178_v2, %v175_v4  ;;  %v193_v13 = vstv %s356_s11  ;;  %s362_s4 = sld [smem:[#allocation3 + $0x6]]  ;;  %v164_v25 = vmax.f32 %v163_v11, 0.0 }
  0x53   :  { %v194_v14 = vmul.f32 %v193_v13, %v530_v0  ;;  %v196_v16 = vstv %s357_s12  ;;  %s363_s17 = sld [smem:[#allocation3 + $0x86]] }
  0x54   :  { %v183_v17 = vadd.f32 %v182_v5, %v179_v12  ;;  %v197_v19 = vmul.f32 %v196_v16, %v532_v1  ;;  %v200_v20 = vstv %s358_s13  ;;  %s364_s18 = sld [smem:[#allocation3 + $0x106]]  ;;  %v167_v36 = vmul.f32 %v166_v28, %v164_v25 }
  0x55   :  { %v201_v23 = vmul.f32 %v200_v20, %v538_v6  ;;  %v204_v24 = vstv %s359_s14  ;;  %s365_s19 = sld [smem:[#allocation3 + $0x186]]  ;;  %s481_s14 = smov [#allocation12]  }
  0x56   :  { %v198_v26 = vadd.f32 %v197_v19, %v194_v14  ;;  %v205_v27 = vmul.f32 %v204_v24, %v545_v15  ;;  %s591_s20 = sld [smem:[#allocation8 + $0x6]]  ;;  %v186_v29 = vadd.f32 %v185_v18, %v183_v17  ;;  %v208_v33 = vstv %s581_s15  ;;  %s317_s15 = sshll.u32 %s481_s14, 4  ;;  %s318_s15 = int_to_ptr.vmem [resolvable:$true] %s317_s15 }
  0x57   :  { %s594_s21 = sld [smem:[#allocation9 + $0x6]]  ;;  %v168_v47 = vadd.f32 %v167_v36, %v145_v32  ;;  %v212_v58 = vstv %s583_s16  ;;  %s445_s16 = scalar_lea.vmem %s318_s15, 128 }
  0x58   :  { %v202_v30 = vadd.f32 %v201_v23, %v198_v26  ;;  %v216_v31 = vstv %s362_s4  ;;  %s368_s22 = sld [smem:[#allocation3 + $0x7]]  ;;  %v187_v40 = vmax.f32 %v186_v29, 0.0  ;;  %p446_p1 = scmp.ne.s32.totalorder %s318_s15, %s445_s16 }
  0x59   :  { %v217_v34 = vmul.f32 %v216_v31, %v530_v0  ;;  %v219_v35 = vstv %s363_s17  ;;  %s369_s23 = sld [smem:[#allocation3 + $0x87]]  ;;  %p450_p2 = scmp.lt.s32.totalorder %s318_s15, %s318_s15 }
  0x5a   :  { %v206_v37 = vadd.f32 %v205_v27, %v202_v30  ;;  %v220_v38 = vmul.f32 %v219_v35, %v532_v1  ;;  %v223_v39 = vstv %s364_s18  ;;  %s370_s24 = sld [smem:[#allocation3 + $0x107]]  ;;  %v190_v50 = vmul.f32 %v189_v43, %v187_v40  ;;  %p451_p3 = scmp.lt.s32.totalorder %s445_s16, %s445_s16 }
  0x5b   :  { %v224_v41 = vmul.f32 %v223_v39, %v538_v6  ;;  %v227_v42 = vstv %s365_s19  ;;  %s371_s25 = sld [smem:[#allocation3 + $0x187]] }
  0x5c   :  { %v209_v44 = vadd.f32 %v208_v33, %v206_v37  ;;  %v221_v45 = vadd.f32 %v220_v38, %v217_v34  ;;  %v228_v46 = vmul.f32 %v227_v42, %v545_v15  ;;  %s602_s26 = sld [smem:[#allocation8 + $0x7]]  ;;  %v231_v51 = vstv %s591_s20  ;;  %p452_p4 = por %p451_p3, %p450_p2 }
  0x5d   :  { %s604_s27 = sld [smem:[#allocation9 + $0x7]]  ;;  %v191_v2 = vadd.f32 %v190_v50, %v168_v47  ;;  %v235_v11 = vstv %s594_s21 }
  0x5e   :  { %v225_v48 = vadd.f32 %v224_v41, %v221_v45  ;;  %v239_v49 = vstv %s368_s22  ;;  %s374_s28 = sld [smem:[#allocation3 + $0x8]]  ;;  %v210_v54 = vmax.f32 %v209_v44, 0.0  ;;  %p453_p5 = pnand %p452_p4, %p446_p1 }
  0x5f   :  { %v240_v52 = vmul.f32 %v239_v49, %v530_v0  ;;  %v242_v53 = vstv %s369_s23  ;;  %s375_s1 = sld [smem:[#allocation3 + $0x88]] }
  0x60   :  { %v229_v55 = vadd.f32 %v228_v46, %v225_v48  ;;  %v243_v56 = vmul.f32 %v242_v53, %v532_v1  ;;  %v246_v57 = vstv %s370_s24  ;;  %s376_s0 = sld [smem:[#allocation3 + $0x108]]  ;;  %v213_v3 = vmul.f32 %v212_v58, %v210_v54 }
  0x61   :  { %v247_v59 = vmul.f32 %v246_v57, %v538_v6  ;;  %v250_v60 = vstv %s371_s25  ;;  %s377_s29 = sld [smem:[#allocation3 + $0x188]] }
  0x62   :  { %v232_v61 = vadd.f32 %v231_v51, %v229_v55  ;;  %v244_v62 = vadd.f32 %v243_v56, %v240_v52  ;;  %v251_v63 = vmul.f32 %v250_v60, %v545_v15  ;;  %s612_s30 = sld [smem:[#allocation8 + $0x8]]  ;;  %v254_v8 = vstv %s602_s26 }
  0x63   :  { %s614_s6 = sld [smem:[#allocation9 + $0x8]]  ;;  %v214_v21 = vadd.f32 %v213_v3, %v191_v2  ;;  %v258_v26 = vstv %s604_s27 }
  0x64   :  { %v248_v4 = vadd.f32 %v247_v59, %v244_v62  ;;  %v262_v5 = vstv %s374_s28  ;;  %s380_s2 = sld [smem:[#allocation3 + $0x9]]  ;;  %v233_v7 = vmax.f32 %v232_v61, 0.0 }
  0x65   :  { %v263_v9 = vmul.f32 %v262_v5, %v530_v0  ;;  %v265_v10 = vstv %s375_s1  ;;  %s381_s7 = sld [smem:[#allocation3 + $0x89]] }
  0x66   :  { %v252_v12 = vadd.f32 %v251_v63, %v248_v4  ;;  %v266_v13 = vmul.f32 %v265_v10, %v532_v1  ;;  %v269_v14 = vstv %s376_s0  ;;  %s382_s8 = sld [smem:[#allocation3 + $0x109]]  ;;  %v236_v22 = vmul.f32 %v235_v11, %v233_v7 }
  0x67   :  { %v270_v16 = vmul.f32 %v269_v14, %v538_v6  ;;  %v273_v17 = vstv %s377_s29  ;;  %s383_s9 = sld [smem:[#allocation3 + $0x189]] }
  0x68   :  { %v255_v18 = vadd.f32 %v254_v8, %v252_v12  ;;  %v267_v19 = vadd.f32 %v266_v13, %v263_v9  ;;  %v274_v20 = vmul.f32 %v273_v17, %v545_v15  ;;  %s384_s10 = sld [smem:[#allocation8 + $0x9]]  ;;  %v277_v27 = vstv %s612_s30 }
  0x69   :  { %v237_v33 = vadd.f32 %v236_v22, %v214_v21  ;;  %s385_s11 = sld [smem:[#allocation9 + $0x9]]  ;;  %v281_v40 = vstv %s614_s6 }
  0x6a   :  { %v256_v23 = vmax.f32 %v255_v18, 0.0  ;;  %v271_v24 = vadd.f32 %v270_v16, %v267_v19  ;;  %v285_v25 = vstv %s380_s2 }
  0x6b   :  { %v286_v28 = vmul.f32 %v285_v25, %v530_v0  ;;  %v288_v29 = vstv %s381_s7 }
  0x6c   :  { %v275_v30 = vadd.f32 %v274_v20, %v271_v24  ;;  %v289_v31 = vmul.f32 %v288_v29, %v532_v1  ;;  %v292_v32 = vstv %s382_s8  ;;  %v259_v36 = vmul.f32 %v258_v26, %v256_v23 }
  0x6d   :  { %v293_v34 = vmul.f32 %v292_v32, %v538_v6  ;;  %v296_v35 = vstv %s383_s9  ;;  %v308_v6 = vstv %s638_s3 }
  0x6e   :  { %v278_v37 = vadd.f32 %v277_v27, %v275_v30  ;;  %v290_v38 = vadd.f32 %v289_v31, %v286_v28  ;;  %v297_v39 = vmul.f32 %v296_v35, %v545_v15  ;;  %v300_v43 = vstv %s384_s10 }
  0x6f   :  { %v260_v0 = vadd.f32 %v259_v36, %v237_v33  ;;  %v304_v1 = vstv %s385_s11 }
  0x70   :  { %v279_v41 = vmax.f32 %v278_v37, 0.0  ;;  %v294_v42 = vadd.f32 %v293_v34, %v290_v38 }
  0x72   :  { %v282_v44 = vmul.f32 %v281_v40, %v279_v41  ;;  %v298_v45 = vadd.f32 %v297_v39, %v294_v42 }
  0x74   :  { %v301_v46 = vadd.f32 %v300_v43, %v298_v45  ;;  %v283_v47 = vadd.f32 %v282_v44, %v260_v0 }
  0x76   :  { %v302_v48 = vmax.f32 %v301_v46, 0.0 }
  0x78   :  { %v305_v49 = vmul.f32 %v304_v1, %v302_v48 }
  0x7a   :  { %v306_v50 = vadd.f32 %v305_v49, %v283_v47 }
  0x7c   :  { %v309_v15 = vadd.f32 %v308_v6, %v306_v50 }
  0x7e   :  { %310 = vst [vmem:[#allocation12] sm:$0xff] %v309_v15 }
  0x7f   :  { %456 = shalt.err (!%p453_p5)
}
  0x80   :  { %320 = dma.vmem_to_hbm [thread:$0]  %s318_s15, 128, %s640_s5, [#allocation5]  }
  0x81   :  { %473 = dma.done.wait [#allocation5], 128  }
  0x82   :  { %474 = vsyncadd [#allocation5], 4294967168 }
  0x83   :  { %324 = vsyncpa [#allocation4], 1 }
  0x84   :  { %325 = vsyncpa [#allocation5], 1 }
  0x85   :  { %326 = vsyncpa [#allocation6], 1 }
  0x86   :  { %327 = vsyncpa [#allocation7], 1 }
  0x87   :  { %328 = vsyncpa [#allocation10], 1 }

</bundles_post_ra>
